<compile_context>
chip_gen: v7x
topology: tpu7x:2x2x1
jax: 0.10.0
libtpu: 0.0.40
codegen_flags: <defaults>
</compile_context>

<pallas_src>
import numpy as np

import jax
import jax.numpy as jnp
from jax import lax
from jax.experimental import pallas as pl
from jax.experimental.pallas import tpu as pltpu


def _round_up(x, m):
    return (x + m - 1) // m * m


# ---------------------------------------------------------------------------
# Fused kernel builder (static geometry baked in via closure).
#   s_ref  : (1, SR, Cs)  f32  space-to-depth slab (per-sample, VMEM-resident)
#   w_ref  : (4, Cs, Cp)  bf16 shift weight matrices (+ all-ones mask column)
#   g_ref  : (1, Cp)      f32  instance-norm gamma (padded)
#   b_ref  : (1, Cp)      f32  instance-norm beta  (padded)
#   vm_ref : (TM, 1)      f32  row-validity mask for the stats (ws==Wo rows &
#                              tail padding excluded)
#   out_ref: (1, OR, Cp)  f32  normalized output (per-sample resident block)
#   sum/ssq scratch: (1, Cp) f32 per-channel running statistics
# ---------------------------------------------------------------------------
def _make_kernel(TM, TMP, Ws, Cout, n_valid, eps=1e-5):
    offs = (0, 1, Ws, Ws + 1)          # (qh, qw) shifts on the flattened slab

    def kernel(s_ref, w_ref, g_ref, b_ref, vm_ref, out_ref, sum_scr, ssq_scr):
        t = pl.program_id(1)

        @pl.when(t == 0)
        def _init():
            sum_scr[...] = jnp.zeros_like(sum_scr)
            ssq_scr[...] = jnp.zeros_like(ssq_scr)

        row0 = pl.multiple_of(t * TM, TM)

        # One aligned dynamic load of the slab rows this tile needs; the four
        # shift operands are static VMEM-local slices of that value.
        blk = s_ref[0, pl.ds(row0, TMP), :]                      # (TMP, Cs) f32

        conv = None
        for s, off in enumerate(offs):
            op = blk[off:off + TM, :].astype(jnp.bfloat16)       # (TM, Cs) bf16
            part = jnp.dot(op, w_ref[s],
                           preferred_element_type=jnp.float32)   # (TM, Cp) f32
            conv = part if conv is None else conv + part

        # Partial-conv renormalization + hole fill (exact division; column
        # Cout of the matmul is the exact mask_sum).
        msum = conv[:, Cout:Cout + 1]                            # (TM, 1)
        holes = msum == 0.0
        renorm = jnp.where(holes, 0.0,
                           conv / jnp.where(holes, 1.0, msum))

        # Stream the renormalized tile into the per-sample resident block.
        out_ref[0, pl.ds(row0, TM), :] = renorm

        # Per-channel statistics (holes count as zeros, exactly like the
        # reference; garbage ws==Wo / tail-pad rows are masked out).
        contrib = renorm * vm_ref[...]                           # (TM, Cp)
        sum_scr[...] += jnp.sum(contrib, axis=0, keepdims=True)
        ssq_scr[...] += jnp.sum(contrib * contrib, axis=0, keepdims=True)

        # Finalize: InstanceNorm2d(affine=True) over the resident block.
        @pl.when(t == pl.num_programs(1) - 1)
        def _finalize():
            inv_n = 1.0 / float(n_valid)
            mean = sum_scr[...] * inv_n
            var = jnp.maximum(ssq_scr[...] * inv_n - mean * mean, 0.0)
            scale = g_ref[...] * lax.rsqrt(var + eps)
            shift = b_ref[...] - mean * scale
            out_ref[0] = out_ref[0] * scale + shift

    return kernel


# ---------------------------------------------------------------------------
# PCBActiv forward (default path)
# ---------------------------------------------------------------------------
def pcb_activ_forward(x, mask, weight, gamma, beta):
    N, Cin, H, W = x.shape
    Cout, Cin_w, KH, KW = weight.shape
    assert (KH, KW) == (4, 4) and Cin_w == Cin
    assert H % 2 == 0 and W % 2 == 0, "down-4 partial conv expects even H, W"

    Ho, Wo = H // 2, W // 2
    Hs, Ws = Ho + 1, Wo + 1            # space-to-depth grid of the padded input
    C1 = Cin + 1                       # + channel-summed mask (drives mask_sum)
    Cs = 4 * C1                        # s2d channels per slab row

    # ---- lane / tile geometry ------------------------------------------------
    lane_mult = 256 if Cout >= 128 else 128      # wider MXU columns on v6e/v7x
    Cp = _round_up(Cout + 1, lane_mult)          # +1: mask_sum output column

    total_rows = Ho * Ws                         # flattened (ho, ws) output rows
    T = max(1, pl.cdiv(total_rows, 512))         # ~512-row tiles, never tiny
    TM = _round_up(max(pl.cdiv(total_rows, T), 8), 8)
    OR = TM * T                                  # padded output rows
    TMP = _round_up(TM + Ws + 1, 8)              # rows a tile reads (with shifts)
    SR = OR - TM + TMP                           # padded slab rows

    # ---- wrapper-side layout plumbing (elementwise + reshapes only) ----------
    xf = x.astype(jnp.float32)
    mf = mask.astype(jnp.float32)
    act = jnp.where(xf > 0, xf, 0.2 * xf) * mf               # LeakyReLU(0.2)*mask
    mc = jnp.sum(mf, axis=1, keepdims=True)                  # channel-summed mask
    slab = jnp.concatenate([act, mc], axis=1)                # (N, C1, H, W)
    slab = jnp.pad(jnp.transpose(slab, (0, 2, 3, 1)),
                   ((0, 0), (1, 1), (1, 1), (0, 0)))         # NHWC, zero pad=1
    # space-to-depth(2): S[n, i*Ws+j, (rh*2+rw)*C1+c] = slab[n, 2i+rh, 2j+rw, c]
    slab = slab.reshape(N, Hs, 2, Ws, 2, C1).transpose(0, 1, 3, 2, 4, 5)
    slab = slab.reshape(N, Hs * Ws, Cs)
    slab = jnp.pad(slab, ((0, 0), (0, SR - Hs * Ws), (0, 0)))

    # ---- four shift weight matrices (qh, qw); bf16 MXU operands ---------------
    w6 = weight.astype(jnp.float32).reshape(Cout, Cin, 2, 2, 2, 2)
    w6 = jnp.transpose(w6, (2, 4, 3, 5, 1, 0))               # (qh,qw,rh,rw,ci,co)
    wq = jnp.zeros((2, 2, 2, 2, C1, Cp), jnp.float32)
    wq = wq.at[:, :, :, :, :Cin, :Cout].set(w6)
    wq = wq.at[:, :, :, :, Cin, Cout].set(1.0)               # all-ones mask column
    wq = wq.reshape(4, Cs, Cp).astype(jnp.bfloat16)

    gamma_p = jnp.pad(gamma.astype(jnp.float32), (0, Cp - Cout),
                      constant_values=1.0).reshape(1, Cp)
    beta_p = jnp.pad(beta.astype(jnp.float32), (0, Cp - Cout)).reshape(1, Cp)

    # Rows with ws == Wo (and tail padding) are garbage lanes of the flattened
    # layout -> excluded from InstanceNorm statistics and sliced off below.
    rr = np.arange(OR)
    vmask = jnp.asarray(((rr % Ws) < Wo) & (rr < total_rows),
                        dtype=jnp.float32).reshape(OR, 1)

    # ---- generation-aware VMEM budget ------------------------------------------
    try:
        vmem_cap = int(pltpu.get_tpu_info().vmem_capacity_bytes)
    except Exception:
        vmem_cap = 64 * 1024 * 1024                          # v7x-safe fallback
    vmem_limit = int(min(vmem_cap * 0.85, 110 * 2 ** 20))

    kernel = _make_kernel(TM, TMP, Ws, Cout, n_valid=Ho * Wo)

    out_flat = pl.pallas_call(
        kernel,
        out_shape=jax.ShapeDtypeStruct((N, OR, Cp), jnp.float32),
        grid=(N, T),
        in_specs=[
            pl.BlockSpec((1, SR, Cs), lambda n, t: (n, 0, 0)),   # per-sample slab
            pl.BlockSpec((4, Cs, Cp), lambda n, t: (0, 0, 0)),   # shift weights
            pl.BlockSpec((1, Cp), lambda n, t: (0, 0)),          # gamma
            pl.BlockSpec((1, Cp), lambda n, t: (0, 0)),          # beta
            pl.BlockSpec((TM, 1), lambda n, t: (t, 0)),          # row validity
        ],
        out_specs=pl.BlockSpec((1, OR, Cp), lambda n, t: (n, 0, 0)),
        scratch_shapes=[pltpu.VMEM((1, Cp), jnp.float32),
                        pltpu.VMEM((1, Cp), jnp.float32)],
        compiler_params=pltpu.CompilerParams(
            dimension_semantics=("parallel", "arbitrary"),
            vmem_limit_bytes=vmem_limit),
    )(slab, wq, gamma_p, beta_p, vmask)

    # Drop row/channel padding and the garbage ws == Wo column; back to NCHW.
    out = out_flat[:, :total_rows, :Cout].reshape(N, Ho, Ws, Cout)
    out = out[:, :, :Wo, :].transpose(0, 3, 1, 2)

    # New mask: channel-independent and tiny -> recomputed with a reduce_window
    # on the channel-summed mask (value-identical to the in-kernel mask_sum).
    msum = lax.reduce_window(mc[:, 0], 0.0, lax.add,
                             (1, 4, 4), (1, 2, 2),
                             ((0, 0), (1, 1), (1, 1)))
    new_mask = jnp.broadcast_to((msum > 0).astype(x.dtype)[:, None],
                                (N, Cout, Ho, Wo))
    return [out, new_mask]


# ---------------------------------------------------------------------------
# Pure-JAX reference (bf16-matched conv operands) for a correctness check.
# ---------------------------------------------------------------------------
def pcb_activ_reference(x, mask, weight, gamma, beta):
    xf = x.astype(jnp.float32)
    mf = mask.astype(jnp.float32)
    act = jnp.where(xf > 0, xf, 0.2 * xf) * mf
    conv = lax.conv_general_dilated(
        act.astype(jnp.bfloat16), weight.astype(jnp.bfloat16),
        window_strides=(2, 2), padding=((1, 1), (1, 1)),
        dimension_numbers=("NCHW", "OIHW", "NCHW"),
        preferred_element_type=jnp.float32)
    ones_w = jnp.ones(weight.shape, jnp.float32)
    msum = lax.conv_general_dilated(
        mf, ones_w, window_strides=(2, 2), padding=((1, 1), (1, 1)),
        dimension_numbers=("NCHW", "OIHW", "NCHW"))
    holes = msum == 0.0
    out = jnp.where(holes, 0.0, conv / jnp.where(holes, 1.0, msum))
    mean = jnp.mean(out, axis=(2, 3), keepdims=True)
    var = jnp.mean(jnp.square(out - mean), axis=(2, 3), keepdims=True)
    out = (gamma.reshape(1, -1, 1, 1) * (out - mean) * lax.rsqrt(var + 1e-5)
           + beta.reshape(1, -1, 1, 1))
    new_mask = jnp.where(holes, 0.0, 1.0)
    return out, new_mask


if __name__ == "__main__":
    key = jax.random.PRNGKey(0)
    k_x, k_m, k_w, k_g, k_b = jax.random.split(key, 5)

    N, Cin, H, W = 2, 4, 16, 16
    Cout = 8

    x = jax.random.normal(k_x, (N, Cin, H, W), dtype=jnp.float32)
    mask = (jax.random.uniform(k_m, (N, Cin, H, W)) > 0.4).astype(jnp.float32)
    mask = mask.at[:, :, 0:6, 0:6].set(0.0)        # force some holes

    weight = 0.1 * jax.random.normal(k_w, (Cout, Cin, 4, 4), dtype=jnp.float32)
    gamma = 1.0 + 0.1 * jax.random.normal(k_g, (Cout,), dtype=jnp.float32)
    beta = 0.1 * jax.random.normal(k_b, (Cout,), dtype=jnp.float32)

    out, new_mask = jax.jit(pcb_activ_forward)(x, mask, weight, gamma, beta)
    jax.block_until_ready(out)
    jax.block_until_ready(new_mask)

    assert out.shape == (N, Cout, H // 2, W // 2)
    assert new_mask.shape == (N, Cout, H // 2, W // 2)

    ref_out, ref_nm = jax.jit(pcb_activ_reference)(x, mask, weight, gamma, beta)
    np.testing.assert_allclose(np.asarray(out), np.asarray(ref_out),
                               atol=2e-2, rtol=2e-2)
    np.testing.assert_allclose(np.asarray(new_mask), np.asarray(ref_nm),
                               atol=0, rtol=0)
    print("KERNEL_OK")
</pallas_src>

<mosaic_0001>
module attributes {stable_mosaic.version = 11 : i64} {
  func.func @kernel(%arg0: i32, %arg1: i32, %arg2: memref<1x88x20xf32, #tpu.memory_space<vmem>>, %arg3: memref<4x20x128xbf16, #tpu.memory_space<vmem>>, %arg4: memref<1x128xf32, #tpu.memory_space<vmem>>, %arg5: memref<1x128xf32, #tpu.memory_space<vmem>>, %arg6: memref<72x1xf32, #tpu.memory_space<vmem>>, %arg7: memref<1x72x128xf32, #tpu.memory_space<vmem>>, %arg8: memref<1x128xf32, #tpu.memory_space<vmem>>, %arg9: memref<1x128xf32, #tpu.memory_space<vmem>>) attributes {dimension_semantics = [#tpu.dimension_semantics<parallel>, #tpu.dimension_semantics<arbitrary>], iteration_bounds = array<i64: 2, 1>, scalar_prefetch = 0 : i64, scratch_operands = 2 : i64, tpu.core_type = #tpu.core_type<tc>, window_params = [{transform_indices = @transform_0, window_bounds = array<i64: 1, 88, 20>}, {pipeline_mode = #tpu.pipeline_mode<synchronous>, transform_indices = @transform_1, window_bounds = array<i64: 4, 20, 128>}, {pipeline_mode = #tpu.pipeline_mode<synchronous>, transform_indices = @transform_2, window_bounds = array<i64: 1, 128>}, {pipeline_mode = #tpu.pipeline_mode<synchronous>, transform_indices = @transform_3, window_bounds = array<i64: 1, 128>}, {transform_indices = @transform_4, window_bounds = array<i64: 72, 1>}, {transform_indices = @transform_5, window_bounds = array<i64: 1, 72, 128>}]} {
    %c0_i32 = arith.constant 0 : i32
    %0 = arith.cmpi eq, %arg1, %c0_i32 : i32
    %1 = arith.extui %0 : i1 to i32
    %c0_i32_0 = arith.constant 0 : i32
    %2 = arith.cmpi ne, %1, %c0_i32_0 : i32
    scf.if %2 {
      %cst_33 = arith.constant 0.000000e+00 : f32
      %63 = vector.broadcast %cst_33 : f32 to vector<1x128xf32>
      %c0_34 = arith.constant 0 : index
      %c0_35 = arith.constant 0 : index
      %64 = vector.load %arg8[%c0_34, %c0_35] : memref<1x128xf32, #tpu.memory_space<vmem>>, vector<1x128xf32>
      tpu.vector_store %arg8[%c0_34, %c0_35], %63 {strides = array<i32>} : memref<1x128xf32, #tpu.memory_space<vmem>>, vector<1x128xf32>,
      %cst_36 = arith.constant 0.000000e+00 : f32
      %65 = vector.broadcast %cst_36 : f32 to vector<1x128xf32>
      %c0_37 = arith.constant 0 : index
      %c0_38 = arith.constant 0 : index
      %66 = vector.load %arg9[%c0_37, %c0_38] : memref<1x128xf32, #tpu.memory_space<vmem>>, vector<1x128xf32>
      tpu.vector_store %arg9[%c0_37, %c0_38], %65 {strides = array<i32>} : memref<1x128xf32, #tpu.memory_space<vmem>>, vector<1x128xf32>,
    } else {
    }
    %c72_i32 = arith.constant 72 : i32
    %3 = arith.muli %arg1, %c72_i32 : i32
    %4 = tpu.assume_multiple %3, 72 : i32
    %c0 = arith.constant 0 : index
    %5 = arith.index_cast %4 : i32 to index
    %c0_1 = arith.constant 0 : index
    %6 = vector.load %arg2[%c0, %5, %c0_1] : memref<1x88x20xf32, #tpu.memory_space<vmem>>, vector<1x88x20xf32>
    %7 = vector.shape_cast %6 : vector<1x88x20xf32> to vector<88x20xf32>
    %8 = vector.extract_strided_slice %7 {offsets = [0, 0], sizes = [72, 20], strides = [1, 1]} : vector<88x20xf32> to vector<72x20xf32>
    %9 = arith.truncf %8 : vector<72x20xf32> to vector<72x20xbf16>
    %c0_2 = arith.constant 0 : index
    %c0_3 = arith.constant 0 : index
    %c0_4 = arith.constant 0 : index
    %10 = vector.load %arg3[%c0_2, %c0_3, %c0_4] : memref<4x20x128xbf16, #tpu.memory_space<vmem>>, vector<1x20x128xbf16>
    %11 = vector.shape_cast %10 : vector<1x20x128xbf16> to vector<20x128xbf16>
    %cst = arith.constant dense<0.000000e+00> : vector<72x128xf32>
    %12 = tpu.matmul %9, %11, %cst {dimension_numbers = #tpu.dot_dimension_numbers<[1], [0], [0], [1], [0, 0, 1, 1], [], []>} : vector<72x20xbf16>, vector<20x128xbf16>, vector<72x128xf32> -> vector<72x128xf32>
    %13 = vector.extract_strided_slice %7 {offsets = [1, 0], sizes = [72, 20], strides = [1, 1]} : vector<88x20xf32> to vector<72x20xf32>
    %14 = arith.truncf %13 : vector<72x20xf32> to vector<72x20xbf16>
    %c1 = arith.constant 1 : index
    %c0_5 = arith.constant 0 : index
    %c0_6 = arith.constant 0 : index
    %15 = vector.load %arg3[%c1, %c0_5, %c0_6] : memref<4x20x128xbf16, #tpu.memory_space<vmem>>, vector<1x20x128xbf16>
    %16 = vector.shape_cast %15 : vector<1x20x128xbf16> to vector<20x128xbf16>
    %cst_7 = arith.constant dense<0.000000e+00> : vector<72x128xf32>
    %17 = tpu.matmul %14, %16, %cst_7 {dimension_numbers = #tpu.dot_dimension_numbers<[1], [0], [0], [1], [0, 0, 1, 1], [], []>} : vector<72x20xbf16>, vector<20x128xbf16>, vector<72x128xf32> -> vector<72x128xf32>
    %18 = arith.addf %12, %17 : vector<72x128xf32>
    %19 = vector.extract_strided_slice %7 {offsets = [9, 0], sizes = [72, 20], strides = [1, 1]} : vector<88x20xf32> to vector<72x20xf32>
    %20 = arith.truncf %19 : vector<72x20xf32> to vector<72x20xbf16>
    %c2 = arith.constant 2 : index
    %c0_8 = arith.constant 0 : index
    %c0_9 = arith.constant 0 : index
    %21 = vector.load %arg3[%c2, %c0_8, %c0_9] : memref<4x20x128xbf16, #tpu.memory_space<vmem>>, vector<1x20x128xbf16>
    %22 = vector.shape_cast %21 : vector<1x20x128xbf16> to vector<20x128xbf16>
    %cst_10 = arith.constant dense<0.000000e+00> : vector<72x128xf32>
    %23 = tpu.matmul %20, %22, %cst_10 {dimension_numbers = #tpu.dot_dimension_numbers<[1], [0], [0], [1], [0, 0, 1, 1], [], []>} : vector<72x20xbf16>, vector<20x128xbf16>, vector<72x128xf32> -> vector<72x128xf32>
    %24 = arith.addf %18, %23 : vector<72x128xf32>
    %25 = vector.extract_strided_slice %7 {offsets = [10, 0], sizes = [72, 20], strides = [1, 1]} : vector<88x20xf32> to vector<72x20xf32>
    %26 = arith.truncf %25 : vector<72x20xf32> to vector<72x20xbf16>
    %c3 = arith.constant 3 : index
    %c0_11 = arith.constant 0 : index
    %c0_12 = arith.constant 0 : index
    %27 = vector.load %arg3[%c3, %c0_11, %c0_12] : memref<4x20x128xbf16, #tpu.memory_space<vmem>>, vector<1x20x128xbf16>
    %28 = vector.shape_cast %27 : vector<1x20x128xbf16> to vector<20x128xbf16>
    %cst_13 = arith.constant dense<0.000000e+00> : vector<72x128xf32>
    %29 = tpu.matmul %26, %28, %cst_13 {dimension_numbers = #tpu.dot_dimension_numbers<[1], [0], [0], [1], [0, 0, 1, 1], [], []>} : vector<72x20xbf16>, vector<20x128xbf16>, vector<72x128xf32> -> vector<72x128xf32>
    %30 = arith.addf %24, %29 : vector<72x128xf32>
    %31 = vector.extract_strided_slice %30 {offsets = [0, 8], sizes = [72, 1], strides = [1, 1]} : vector<72x128xf32> to vector<72x1xf32>
    %cst_14 = arith.constant 0.000000e+00 : f32
    %32 = vector.broadcast %cst_14 : f32 to vector<72x1xf32>
    %33 = arith.cmpf oeq, %31, %32 : vector<72x1xf32>
    %cst_15 = arith.constant 1.000000e+00 : f32
    %34 = vector.broadcast %cst_15 : f32 to vector<72x1xf32>
    %35 = arith.select %33, %34, %31 : vector<72x1xi1>, vector<72x1xf32>
    %36 = vector.broadcast %35 : vector<72x1xf32> to vector<72x128xf32>
    %37 = arith.divf %30, %36 : vector<72x128xf32>
    %cst_16 = arith.constant 0.000000e+00 : f32
    %38 = vector.shape_cast %33 : vector<72x1xi1> to vector<72x1xi1>
    %39 = vector.broadcast %38 : vector<72x1xi1> to vector<72x128xi1>
    %40 = vector.broadcast %cst_16 : f32 to vector<72x128xf32>
    %41 = arith.select %39, %40, %37 : vector<72x128xi1>, vector<72x128xf32>
    %c0_17 = arith.constant 0 : index
    %42 = arith.index_cast %4 : i32 to index
    %c0_18 = arith.constant 0 : index
    %43 = vector.load %arg7[%c0_17, %42, %c0_18] : memref<1x72x128xf32, #tpu.memory_space<vmem>>, vector<1x72x128xf32>
    %44 = vector.shape_cast %43 : vector<1x72x128xf32> to vector<72x128xf32>
    %45 = vector.shape_cast %41 : vector<72x128xf32> to vector<1x72x128xf32>
    tpu.vector_store %arg7[%c0_17, %42, %c0_18], %45 {strides = array<i32>} : memref<1x72x128xf32, #tpu.memory_space<vmem>>, vector<1x72x128xf32>,
    %c0_19 = arith.constant 0 : index
    %c0_20 = arith.constant 0 : index
    %46 = vector.load %arg6[%c0_19, %c0_20] : memref<72x1xf32, #tpu.memory_space<vmem>>, vector<72x1xf32>
    %47 = vector.broadcast %46 : vector<72x1xf32> to vector<72x128xf32>
    %48 = arith.mulf %41, %47 : vector<72x128xf32>
    %c0_21 = arith.constant 0 : index
    %c0_22 = arith.constant 0 : index
    %49 = vector.load %arg8[%c0_21, %c0_22] : memref<1x128xf32, #tpu.memory_space<vmem>>, vector<1x128xf32>
    %cst_23 = arith.constant dense<0.000000e+00> : vector<128xf32>
    %50 = vector.multi_reduction <add>, %48, %cst_23 [0] : vector<72x128xf32> to vector<128xf32>
    %51 = vector.shape_cast %50 : vector<128xf32> to vector<1x128xf32>
    %52 = arith.addf %49, %51 : vector<1x128xf32>
    %c0_24 = arith.constant 0 : index
    %c0_25 = arith.constant 0 : index
    %53 = vector.load %arg8[%c0_24, %c0_25] : memref<1x128xf32, #tpu.memory_space<vmem>>, vector<1x128xf32>
    tpu.vector_store %arg8[%c0_24, %c0_25], %52 {strides = array<i32>} : memref<1x128xf32, #tpu.memory_space<vmem>>, vector<1x128xf32>,
    %c0_26 = arith.constant 0 : index
    %c0_27 = arith.constant 0 : index
    %54 = vector.load %arg9[%c0_26, %c0_27] : memref<1x128xf32, #tpu.memory_space<vmem>>, vector<1x128xf32>
    %55 = arith.mulf %48, %48 : vector<72x128xf32>
    %cst_28 = arith.constant dense<0.000000e+00> : vector<128xf32>
    %56 = vector.multi_reduction <add>, %55, %cst_28 [0] : vector<72x128xf32> to vector<128xf32>
    %57 = vector.shape_cast %56 : vector<128xf32> to vector<1x128xf32>
    %58 = arith.addf %54, %57 : vector<1x128xf32>
    %c0_29 = arith.constant 0 : index
    %c0_30 = arith.constant 0 : index
    %59 = vector.load %arg9[%c0_29, %c0_30] : memref<1x128xf32, #tpu.memory_space<vmem>>, vector<1x128xf32>
    tpu.vector_store %arg9[%c0_29, %c0_30], %58 {strides = array<i32>} : memref<1x128xf32, #tpu.memory_space<vmem>>, vector<1x128xf32>,
    %c0_i32_31 = arith.constant 0 : i32
    %60 = arith.cmpi eq, %arg1, %c0_i32_31 : i32
    %61 = arith.extui %60 : i1 to i32
    %c0_i32_32 = arith.constant 0 : i32
    %62 = arith.cmpi ne, %61, %c0_i32_32 : i32
    scf.if %62 {
      %c0_33 = arith.constant 0 : index
      %c0_34 = arith.constant 0 : index
      %63 = vector.load %arg8[%c0_33, %c0_34] : memref<1x128xf32, #tpu.memory_space<vmem>>, vector<1x128xf32>
      %cst_35 = arith.constant 1.562500e-02 : f32
      %64 = vector.broadcast %cst_35 : f32 to vector<1x128xf32>
      %65 = arith.mulf %63, %64 : vector<1x128xf32>
      %c0_36 = arith.constant 0 : index
      %c0_37 = arith.constant 0 : index
      %66 = vector.load %arg9[%c0_36, %c0_37] : memref<1x128xf32, #tpu.memory_space<vmem>>, vector<1x128xf32>
      %cst_38 = arith.constant 1.562500e-02 : f32
      %67 = vector.broadcast %cst_38 : f32 to vector<1x128xf32>
      %68 = arith.mulf %66, %67 : vector<1x128xf32>
      %69 = arith.mulf %65, %65 : vector<1x128xf32>
      %70 = arith.subf %68, %69 : vector<1x128xf32>
      %cst_39 = arith.constant 0.000000e+00 : f32
      %71 = vector.broadcast %cst_39 : f32 to vector<1x128xf32>
      %72 = arith.maximumf %70, %71 : vector<1x128xf32>
      %c0_40 = arith.constant 0 : index
      %c0_41 = arith.constant 0 : index
      %73 = vector.load %arg4[%c0_40, %c0_41] : memref<1x128xf32, #tpu.memory_space<vmem>>, vector<1x128xf32>
      %cst_42 = arith.constant 9.99999974E-6 : f32
      %74 = vector.broadcast %cst_42 : f32 to vector<1x128xf32>
      %75 = arith.addf %72, %74 : vector<1x128xf32>
      %76 = math.rsqrt %75 : vector<1x128xf32>
      %77 = arith.mulf %73, %76 : vector<1x128xf32>
      %c0_43 = arith.constant 0 : index
      %c0_44 = arith.constant 0 : index
      %78 = vector.load %arg5[%c0_43, %c0_44] : memref<1x128xf32, #tpu.memory_space<vmem>>, vector<1x128xf32>
      %79 = arith.mulf %65, %77 : vector<1x128xf32>
      %80 = arith.subf %78, %79 : vector<1x128xf32>
      %c0_45 = arith.constant 0 : index
      %c0_46 = arith.constant 0 : index
      %c0_47 = arith.constant 0 : index
      %81 = vector.load %arg7[%c0_45, %c0_46, %c0_47] : memref<1x72x128xf32, #tpu.memory_space<vmem>>, vector<1x72x128xf32>
      %82 = vector.shape_cast %81 : vector<1x72x128xf32> to vector<72x128xf32>
      %83 = vector.broadcast %77 : vector<1x128xf32> to vector<72x128xf32>
      %84 = arith.mulf %82, %83 : vector<72x128xf32>
      %85 = vector.broadcast %80 : vector<1x128xf32> to vector<72x128xf32>
      %86 = arith.addf %84, %85 : vector<72x128xf32>
      %c0_48 = arith.constant 0 : index
      %c0_49 = arith.constant 0 : index
      %c0_50 = arith.constant 0 : index
      %87 = vector.load %arg7[%c0_48, %c0_49, %c0_50] : memref<1x72x128xf32, #tpu.memory_space<vmem>>, vector<1x72x128xf32>
      %88 = vector.shape_cast %87 : vector<1x72x128xf32> to vector<72x128xf32>
      %89 = vector.shape_cast %86 : vector<72x128xf32> to vector<1x72x128xf32>
      tpu.vector_store %arg7[%c0_48, %c0_49, %c0_50], %89 {strides = array<i32>} : memref<1x72x128xf32, #tpu.memory_space<vmem>>, vector<1x72x128xf32>,
    } else {
    }
    return
  }
  func.func @transform_0(%arg0: i32, %arg1: i32) -> (i32, i32, i32) {
    %c0_i32 = arith.constant 0 : i32
    %c0_i32_0 = arith.constant 0 : i32
    %c0_i32_1 = arith.constant 0 : i32
    return %arg0, %c0_i32, %c0_i32_0 : i32, i32, i32
  }
  func.func @transform_1(%arg0: i32, %arg1: i32) -> (i32, i32, i32) {
    %c0_i32 = arith.constant 0 : i32
    %c0_i32_0 = arith.constant 0 : i32
    %c0_i32_1 = arith.constant 0 : i32
    %c0_i32_2 = arith.constant 0 : i32
    return %c0_i32, %c0_i32_0, %c0_i32_1 : i32, i32, i32
  }
  func.func @transform_2(%arg0: i32, %arg1: i32) -> (i32, i32) {
    %c0_i32 = arith.constant 0 : i32
    %c0_i32_0 = arith.constant 0 : i32
    %c0_i32_1 = arith.constant 0 : i32
    return %c0_i32, %c0_i32_0 : i32, i32
  }
  func.func @transform_3(%arg0: i32, %arg1: i32) -> (i32, i32) {
    %c0_i32 = arith.constant 0 : i32
    %c0_i32_0 = arith.constant 0 : i32
    %c0_i32_1 = arith.constant 0 : i32
    return %c0_i32, %c0_i32_0 : i32, i32
  }
  func.func @transform_4(%arg0: i32, %arg1: i32) -> (i32, i32) {
    %c0_i32 = arith.constant 0 : i32
    %c0_i32_0 = arith.constant 0 : i32
    return %arg1, %c0_i32 : i32, i32
  }
  func.func @transform_5(%arg0: i32, %arg1: i32) -> (i32, i32, i32) {
    %c0_i32 = arith.constant 0 : i32
    %c0_i32_0 = arith.constant 0 : i32
    %c0_i32_1 = arith.constant 0 : i32
    return %arg0, %c0_i32, %c0_i32_0 : i32, i32, i32
  }
}

</mosaic_0001>

<bundles_post_ra>
// kernel: pcb_activ_forward.1
= control target key start
LH: loop header
LB: loop body
LE: loop exit
PB: predicated region body
PF: predicated region fallthrough
CT: control target
= control target key end

     0   :  { %s1552_s18 = smov 0   ;;  %s1554_s19 = smov 0   ;;  %s1904_s0 = inlined_call_operand.vmem [shape: f32[2,88,20], index: 0, kind: input, shape index: {}]   ;;  %s1905_s1 = inlined_call_operand.vmem [shape: bf16[4,20,128], index: 1, kind: input, shape index: {}]   ;;  %s1906_s2 = inlined_call_operand.vmem [shape: f32[1,128], index: 2, kind: input, shape index: {}]   ;;  %s1907_s3 = inlined_call_operand.vmem [shape: f32[1,128], index: 3, kind: input, shape index: {}]   ;;  %s1908_s4 = inlined_call_operand.vmem [shape: f32[72,1], index: 4, kind: input, shape index: {}]   ;;  %s1909_s5 = inlined_call_operand.vmem [shape: f32[2,72,128], index: 5, kind: output, shape index: {}]  }
   0x1   :  { %s1556_s20 = smov 0  }
   0x2 LB: > { %s27_s21 = sadd.s32 1, %s1512_s19  ;;  %p1215_p0 = scmp.ge.s32.totalorder %s1516_s20, 1  ;;  %s1516_s20 = sphi %s1556_s20, %s15_s20   ;;  %s1512_s19 = sphi %s1554_s19, %s1911_s19   ;;  %s1508_s18 = sphi %s1552_s18, %s1910_s18  }
   0x3   : > { %p29_p1 = scmp.ge.s32.totalorder %s27_s21, 2  ;;  %p210_p2 = scmp.lt.s32.totalorder %s1516_s20, 3 }
   0x5   : > { %s1913_s21 = smov (%p29_p1, %s27_s21), 0  ;;  %p211_p3 = pnand %p1215_p0, %p210_p2 }
   0x6   : > { %v1466_v0 = vld [vmem:[%s1905_s1 + $0xc] sm:$0xff] (!%p211_p3)   ;;  %v1518_v1 = vmov (!%p211_p3), 0.0   ;;  %v1467_v2 = vld [vmem:[%s1905_s1 + $0x18] sm:$0xff] (!%p211_p3)   ;;  %vm357_vm0 = vcmask (!%p211_p3), 1041408   ;;  %p243_p4 = scmp.lt.s32.totalorder (!%p211_p3), %s1508_s18, 1  ;;  %vm1519_vm1 = vmmov (!%p211_p3), 0  }
   0x7   : > { %214 = sbr.rel (%p211_p3) target bundleno = 527 (0x20f), region = 40  ;;  %1285 = vmatprep.subr.bf16.mxu1 (!%p211_p3), %v1518_v1  ;;  %264 = vst [vmem:[#allocation2] sm:$0x1] (!%p211_p3), %v1518_v1  ;;  %265 = vst [vmem:[#allocation3] sm:$0x1] (!%p211_p3), %v1518_v1  ;;  %1333 = vmatprep.subr.bf16.mxu0 (!%p211_p3), %v1518_v1  ;;  %v1520_v7 = vmov (!%p211_p3), 0  }
   0x8   : > { %1286 = vmatpush3.bf16.msra.mxu1 (!%p211_p3), %v1466_v0  ;;  %v1468_v3 = vld [vmem:[%s1905_s1 + $0x14] ss:$0 sps:$4 sm:$0x33] (!%p211_p3)   ;;  %1334 = vmatpush3.bf16.msra.mxu0 (!%p211_p3), %v1467_v2  ;;  %v1469_v4 = vld [vmem:[%s1905_s1 + $0x20] ss:$0 sps:$4 sm:$0x33] (!%p211_p3)  }
   0x9   : > { %1287 = vmatprep.subr.bf16.mxu1 (!%p211_p3), %v1518_v1  ;;  %1335 = vmatprep.subr.bf16.mxu0 (!%p211_p3), %v1518_v1  ;;  %v359_v5 = vsel (!%p211_p3), %vm357_vm0, %v1468_v3, 0  ;;  %v601_v6 = vsel (!%p211_p3), %vm357_vm0, %v1469_v4, 0  ;;  %v956_v8 = vld [vmem:[%s1908_s4] sm:$0xff] (!%p211_p3)  ;;  %v958_v9 = vld [vmem:[%s1908_s4 + $0x10] sm:$0xff] (!%p211_p3)  ;;  %vm292_vm2 = vsmask.f32 (!%p211_p3), 7424 }
   0xa   : > { %1289 = vmatprep.mubr.msk.bf16.mxu1 (!%p211_p3), %vm1519_vm1, %v1518_v1  ;;  %1337 = vmatprep.mubr.msk.bf16.mxu0 (!%p211_p3), %vm1519_vm1, %v1518_v1  ;;  %vm341_vm3 = vcmask (!%p211_p3), 162816   ;;  %v959_v31 = vld [vmem:[%s1908_s4 + $0x18] sm:$0xff] (!%p211_p3)  ;;  %v1470_v33 = vld [vmem:[%s1905_s1] sm:$0xff] (!%p211_p3)   ;;  %v1472_v43 = vld [vmem:[%s1905_s1 + $0x8] ss:$0 sps:$4 sm:$0x33] (!%p211_p3)  }
   0xb   : > { %1460 = vset.pattern.permute.xlu0 (!%p211_p3), %v1520_v7  ;;  %1461 = vset.pattern.permute.xlu1 (!%p211_p3), %v1520_v7  ;;  %v1471_v35 = vld [vmem:[%s1905_s1 + $0x24] sm:$0xff] (!%p211_p3)   ;;  %v1473_v45 = vld [vmem:[%s1905_s1 + $0x2c] ss:$0 sps:$4 sm:$0x33] (!%p211_p3)   ;;  %v454_v55 = vsel (!%p211_p3), %vm357_vm0, %v1472_v43, 0  ;;  %vm693_vm4 = vcmask (!%p211_p3), 1046528  }
   0xc   : > { %1288 = vmatpush3.bf16.msra.mxu1 (!%p211_p3), %v359_v5  ;;  %1336 = vmatpush3.bf16.msra.mxu0 (!%p211_p3), %v601_v6  ;;  %v960_v54 = vld [vmem:[%s1908_s4 + $0x20] sm:$0xff] (!%p211_p3)  ;;  %v728_v56 = vsel (!%p211_p3), %vm357_vm0, %v1473_v45, 0  ;;  %v961_v2 = vld [vmem:[%s1908_s4 + $0x28] sm:$0xff] (!%p211_p3) }
   0xd   : > { %1309 = vmatprep.subr.bf16.mxu1 (!%p211_p3), %v1518_v1  ;;  %1357 = vmatprep.subr.bf16.mxu0 (!%p211_p3), %v1518_v1 }
   0xe   : > { %s1915_s18 = smov (!%p243_p4, %s1508_s18), 1  ;;  %967 = vperm.xlu0 %1460, %v956_v8  }
   0xf   : > { %s1430_s30 = smul.u32 88, %s1915_s18 }
  0x10   : > { %s1431_s22 = smul.u32 72, %s1915_s18 }
  0x11   : > { %s1606_s8 = scalar_lea.vmem %s1904_s0, %s1430_s30 }
  0x12   : > { %v268_v10 = vld [vmem:[%s1606_s8] sm:$0xff]  ;;  %v269_v11 = vld [vmem:[%s1606_s8 + $0x8] sm:$0xff]  ;;  %v270_v12 = vld [vmem:[%s1606_s8 + $0x10] sm:$0xff]  ;;  %977 = vperm.xlu0 %1460, %v958_v9   ;;  %s258_s25 = scalar_lea.vmem %s1909_s5, %s1431_s22 }
  0x13   : > { %v271_v13 = vld [vmem:[%s1606_s8 + $0x18] sm:$0xff]  ;;  %v1620_v14 = vpack.c.bf16 %v269_v11, %v268_v10  ;;  %v272_v15 = vld [vmem:[%s1606_s8 + $0x20] sm:$0xff]  ;;  %v1623_v16 = vpack.c.bf16 %v270_v12, %v269_v11  ;;  %v273_v17 = vld [vmem:[%s1606_s8 + $0x28] sm:$0xff] }
  0x14   : > { %v1626_v18 = vpack.c.bf16 %v271_v13, %v270_v12  ;;  %v1628_v19 = vpack.c.bf16 %v272_v15, %v271_v13  ;;  %v1630_v20 = vpack.c.bf16 %v273_v17, %v272_v15  ;;  %v274_v21 = vld [vmem:[%s1606_s8 + $0x30] sm:$0xff]  ;;  %v275_v42 = vld [vmem:[%s1606_s8 + $0x38] sm:$0xff]  ;;  %v1659_v44 = vld [vmem:[%s1606_s8 + $0x40] sm:$0xff] }
  0x15   : > { %v294_v22 = vshrl.u32 %v1620_v14, 16  ;;  %v296_v23 = vshll.u32 %v1620_v14, 16  ;;  %v538_v24 = vshrl.u32 %v1623_v16, 16  ;;  %v540_v25 = vshll.u32 %v1623_v16, 16  ;;  %v277_v63 = vld [vmem:[%s1606_s8 + $0x48] sm:$0xff]  ;;  %v278_v0 = vld [vmem:[%s1606_s8 + $0x50] sm:$0xff] }
  0x16   : > { %v301_v26 = vshll.u32 %v1626_v18, 16  ;;  %v545_v27 = vshll.u32 %v1628_v19, 16  ;;  %v1639_v30 = vpack.c.bf16 %v274_v21, %v273_v17  ;;  %v305_v36 = vshrl.u32 %v1626_v18, 16  ;;  %982 = vperm.xlu0 %1460, %v959_v31  }
  0x17   : > { %v298_v28 = vrot.slane %v296_v23, 1  ;;  %v542_v29 = vrot.slane %v540_v25, 1  ;;  %v309_v37 = vshll.u32 %v1630_v20, 16  ;;  %v549_v40 = vshrl.u32 %v1628_v19, 16 }
  0x18   : > { %v303_v32 = vrot.slane %v301_v26, 1  ;;  %v547_v34 = vrot.slane %v545_v27, 1  ;;  %v553_v41 = vshll.u32 %v1639_v30, 16  ;;  %v1668_v49 = vpack.c.bf16 %v275_v42, %v274_v21 }
  0x19   : > { %v299_v38 = vor.u32 %v298_v28, %v294_v22  ;;  %v543_v39 = vor.u32 %v542_v29, %v538_v24  ;;  %v311_v48 = vrot.slane %v309_v37, 1  ;;  %v1671_v53 = vpack.c.bf16 %v1659_v44, %v275_v42 }
  0x1a   : > { %v307_v50 = vor.u32 %v305_v36, %v303_v32  ;;  %v551_v51 = vor.u32 %v549_v40, %v547_v34  ;;  %v555_v52 = vrot.slane %v553_v41, 1  ;;  %v313_v57 = vshrl.u32 %v1630_v20, 16  ;;  %987 = vperm.xlu0 %1460, %v960_v54   ;;  %v957_v36 = vld [vmem:[%s1908_s4 + $0x8] sm:$0xff] }
  0x1b   : > { %v304_v46 = vsel %vm292_vm2, %v299_v38, %v303_v32  ;;  %v548_v47 = vsel %vm292_vm2, %v543_v39, %v547_v34  ;;  %v317_v58 = vshll.u32 %v1668_v49, 16  ;;  %v557_v61 = vshrl.u32 %v1639_v30, 16  ;;  %972 = vperm.xlu1 %1461, %v957_v36  }
  0x1c   : > { %1290 = vmatmul.mubr.msk.bf16.vlgmr.msra.gmra.mrb[0].mxu1 %vm341_vm3, %v304_v46  ;;  %1338 = vmatmul.mubr.msk.bf16.vlgmr.msra.gmra.mrb[0].mxu0 %vm341_vm3, %v548_v47  ;;  %v312_v59 = vsel %vm292_vm2, %v307_v50, %v311_v48  ;;  %v556_v60 = vsel %vm292_vm2, %v551_v51, %v555_v52  ;;  %v561_v62 = vshll.u32 %v1671_v53, 16  ;;  %v315_v3 = vor.u32 %v313_v57, %v311_v48 }
  0x1d   : > { %1310 = vmatpush3.bf16.msra.mxu1 %v1470_v33  ;;  %1358 = vmatpush3.bf16.msra.mxu0 %v1471_v35  ;;  %v319_v4 = vrot.slane %v317_v58, 1  ;;  %v559_v5 = vor.u32 %v557_v61, %v555_v52  ;;  %v287_v8 = vpack.c.bf16 %v277_v63, %v1659_v44  ;;  %v532_v9 = vpack.c.bf16 %v278_v0, %v277_v63 }
  0x1e   : > { %1293 = vmatprep.mubr.msk.bf16.mxu1 %vm1519_vm1, %v1518_v1  ;;  %1341 = vmatprep.mubr.msk.bf16.mxu0 %vm1519_vm1, %v1518_v1  ;;  %v563_v6 = vrot.slane %v561_v62, 1  ;;  %v321_v11 = vshrl.u32 %v1668_v49, 16  ;;  %v565_v15 = vshrl.u32 %v1671_v53, 16  ;;  %v694_v32 = vrot.slane %v1623_v16, 1 }
  0x1f   : > { %1311 = vmatprep.subr.bf16.mxu1 %v1518_v1  ;;  %1359 = vmatprep.subr.bf16.mxu0 %v1518_v1  ;;  %v320_v10 = vsel %vm292_vm2, %v315_v3, %v319_v4  ;;  %v325_v13 = vshll.u32 %v287_v8, 16  ;;  %v569_v17 = vshll.u32 %v532_v9, 16  ;;  %v329_v27 = vshrl.u32 %v287_v8, 16 }
  0x20   : > { %992 = vperm.xlu0 %1460, %v961_v2   ;;  %v564_v12 = vsel %vm292_vm2, %v559_v5, %v563_v6  ;;  %v323_v21 = vor.u32 %v321_v11, %v319_v4  ;;  %v567_v23 = vor.u32 %v565_v15, %v563_v6  ;;  %v573_v28 = vshrl.u32 %v532_v9, 16 }
  0x21   : > { %1312 = vmatpush3.bf16.msra.mxu1 %v454_v55  ;;  %1360 = vmatpush3.bf16.msra.mxu0 %v728_v56  ;;  %v327_v22 = vrot.slane %v325_v13, 1  ;;  %v571_v24 = vrot.slane %v569_v17, 1  ;;  %v695_v33 = vrot.slane %v1628_v19, 1  ;;  %v697_v35 = vrot.slane %v1639_v30, 1 }
  0x22   : > { %v1521_v37 = vmov 8  }
  0x23   : > { %v328_v25 = vsel %vm292_vm2, %v323_v21, %v327_v22  ;;  %v572_v26 = vsel %vm292_vm2, %v567_v23, %v571_v24  ;;  %v331_v29 = vor.u32 %v329_v27, %v327_v22  ;;  %v575_v31 = vor.u32 %v573_v28, %v571_v24  ;;  %1462 = vset.pattern.permute.xlu1 %v1521_v37 }
  0x24   : > { %1294 = vmatmul.mubr.msk.bf16.gmra.mrb[4].mxu1 %vm341_vm3, %v312_v59  ;;  %1342 = vmatmul.mubr.msk.bf16.gmra.mrb[4].mxu0 %vm341_vm3, %v556_v60  ;;  %v696_v34 = vsel %vm693_vm4, %v694_v32, %v695_v33  ;;  %v698_v16 = vsel %vm693_vm4, %v695_v33, %v697_v35 }
  0x25   : > { %1297 = vmatprep.mubr.msk.bf16.mxu1 %vm1519_vm1, %v1518_v1  ;;  %1345 = vmatprep.mubr.msk.bf16.mxu0 %vm1519_vm1, %v1518_v1 }
  0x26   : > { %1463 = vset.pattern.permute.xlu0 %v1521_v37 }
  0x2c   : > { %1298 = vmatmul.mubr.msk.bf16.gmra.mrb[8].mxu1 %vm341_vm3, %v320_v10  ;;  %1346 = vmatmul.mubr.msk.bf16.gmra.mrb[8].mxu0 %vm341_vm3, %v564_v12 }
  0x2d   : > { %1301 = vmatprep.mubr.msk.bf16.mxu1 %vm1519_vm1, %v1518_v1  ;;  %1349 = vmatprep.mubr.msk.bf16.mxu0 %vm1519_vm1, %v1518_v1 }
  0x34   : > { %1302 = vmatmul.mubr.msk.bf16.gmra.mrb[12].mxu1 %vm341_vm3, %v328_v25  ;;  %1350 = vmatmul.mubr.msk.bf16.gmra.mrb[12].mxu0 %vm341_vm3, %v572_v26 }
  0x35   : > { %1305 = vmatprep.mubr.msk.bf16.mxu1 %vm1519_vm1, %v1518_v1  ;;  %1353 = vmatprep.mubr.msk.bf16.mxu0 %vm1519_vm1, %v1518_v1 }
  0x3c   : > { %1306 = vmatmul.mubr.msk.bf16.gmra.mrb[16].mxu1 %vm341_vm3, %v331_v29  ;;  %1354 = vmatmul.mubr.msk.bf16.gmra.mrb[16].mxu0 %vm341_vm3, %v575_v31 }
  0x3d   : > { %1313 = vmatprep.mubr.msk.bf16.mxu1 %vm1519_vm1, %v1518_v1  ;;  %1361 = vmatprep.mubr.msk.bf16.mxu0 %vm1519_vm1, %v1518_v1 }
  0x44   : > { %1314 = vmatmul.mubr.msk.bf16.vlgmr.msra.gmra.mrb[0].mxu1 %vm341_vm3, %v1620_v14  ;;  %1362 = vmatmul.mubr.msk.bf16.vlgmr.msra.gmra.mrb[0].mxu0 %vm341_vm3, %v696_v34  ;;  %v699_v14 = vrot.slane %v1671_v53, 1 }
  0x45   : > { %1317 = vmatprep.mubr.msk.bf16.mxu1 %vm1519_vm1, %v1518_v1  ;;  %1365 = vmatprep.mubr.msk.bf16.mxu0 %vm1519_vm1, %v1518_v1 }
  0x46   : > { %v700_v19 = vsel %vm693_vm4, %v697_v35, %v699_v14 }
  0x4c   : > { %1318 = vmatmul.mubr.msk.bf16.gmra.mrb[4].mxu1 %vm341_vm3, %v1626_v18  ;;  %1366 = vmatmul.mubr.msk.bf16.gmra.mrb[4].mxu0 %vm341_vm3, %v698_v16  ;;  %v701_v18 = vrot.slane %v532_v9, 1 }
  0x4d   : > { %1321 = vmatprep.mubr.msk.bf16.mxu1 %vm1519_vm1, %v1518_v1  ;;  %1369 = vmatprep.mubr.msk.bf16.mxu0 %vm1519_vm1, %v1518_v1 }
  0x4e   : > { %v702_v30 = vsel %vm693_vm4, %v699_v14, %v701_v18 }
  0x54   : > { %1322 = vmatmul.mubr.msk.bf16.gmra.mrb[8].mxu1 %vm341_vm3, %v1630_v20  ;;  %1370 = vmatmul.mubr.msk.bf16.gmra.mrb[8].mxu0 %vm341_vm3, %v700_v19  ;;  %v283_v20 = vpack.c.bf16 %v1659_v44, %v1659_v44 }
  0x55   : > { %1325 = vmatprep.mubr.msk.bf16.mxu1 %vm1519_vm1, %v1518_v1  ;;  %1373 = vmatprep.mubr.msk.bf16.mxu0 %vm1519_vm1, %v1518_v1 }
  0x5c   : > { %1326 = vmatmul.mubr.msk.bf16.gmra.mrb[12].mxu1 %vm341_vm3, %v1668_v49  ;;  %1374 = vmatmul.mubr.msk.bf16.gmra.mrb[12].mxu0 %vm341_vm3, %v702_v30 }
  0x5d   : > { %1329 = vmatprep.mubr.msk.bf16.mxu1 %vm1519_vm1, %v1518_v1  ;;  %1377 = vmatprep.mubr.msk.bf16.mxu0 %vm1519_vm1, %v1518_v1 }
  0x64   : > { %1330 = vmatmul.mubr.msk.bf16.gmra.mrb[16].mxu1 %vm341_vm3, %v283_v20  ;;  %1378 = vmatmul.mubr.msk.bf16.gmra.mrb[16].mxu0 %vm341_vm3, %v701_v18 }
 0x117   : > { %v490_v38 = vpop.f32.mrb[0].mxu1  ;;  %v764_v39 = vpop.f32.mrb[0].mxu0 }
 0x118   : > { %v1769_v40 = vadd.f32 %v764_v39, %v490_v38  ;;  %v1315_v1 = vpop.f32.mrb[1].mxu1  ;;  %v1363_v41 = vpop.f32.mrb[1].mxu0  ;;  %v962_v38 = vld [vmem:[%s1908_s4 + $0x30] sm:$0xff] }
 0x119   : > { %v493_v42 = vpop.f32.mrb[2].mxu1  ;;  %v767_v43 = vpop.f32.mrb[2].mxu0  ;;  %v963_v1 = vld [vmem:[%s1908_s4 + $0x38] sm:$0xff] }
 0x11a   : > { %v1771_v44 = vadd.f32 %v767_v43, %v493_v42  ;;  %v1316_v45 = vpop.f32.mrb[3].mxu1  ;;  %v1364_v46 = vpop.f32.mrb[3].mxu0  ;;  %vm811_vm5 = vcmp.eq.f32.partialorder %v1769_v40, 0.0 }
 0x11b   : > { %v820_v47 = vsel %vm811_vm5, 1.0, %v1769_v40  ;;  %v892_v34 = vsel %vm811_vm5, 1, %v1520_v7  ;;  %v964_v45 = vld [vmem:[%s1908_s4 + $0x40] sm:$0xff]  ;;  %v968_v46 = vpop.permute.xlu0 %967 }
 0x11c   : > { %831 = vperm.xlu0 %1463, %v820_v47   ;;  %vm812_vm6 = vcmp.eq.f32.partialorder %v1771_v44, 0.0 }
 0x11d   : > { %v893_v48 = vsel %vm812_vm6, 1, %v1520_v7  ;;  %v821_v51 = vsel %vm812_vm6, 1.0, %v1771_v44 }
 0x11e   : > { %905 = vperm.xlu1 %1462, %v893_v48  }
 0x11f   : > { %v498_v49 = vpop.f32.mrb[4].mxu1  ;;  %v772_v50 = vpop.f32.mrb[4].mxu0 }
 0x120   : > { %v1780_v52 = vadd.f32 %v772_v50, %v498_v49  ;;  %v1367_v53 = vpop.f32.mrb[5].mxu0  ;;  %836 = vperm.xlu0 %1463, %v821_v51   ;;  %v1319_v54 = vpop.f32.mrb[5].mxu1 }
 0x121   : > { %v501_v55 = vpop.f32.mrb[6].mxu1  ;;  %v775_v56 = vpop.f32.mrb[6].mxu0 }
 0x122   : > { %v1782_v57 = vadd.f32 %v775_v56, %v501_v55  ;;  %v1320_v58 = vpop.f32.mrb[7].mxu1  ;;  %v1368_v59 = vpop.f32.mrb[7].mxu0  ;;  %vm813_vm7 = vcmp.eq.f32.partialorder %v1780_v52, 0.0 }
 0x123   : > { %v822_v60 = vsel %vm813_vm7, 1.0, %v1780_v52  ;;  %v894_v63 = vsel %vm813_vm7, 1, %v1520_v7  ;;  %v978_v47 = vpop.permute.xlu0 %977  ;;  %v973_v51 = vpop.permute.xlu1 %972 }
 0x124   : > { %841 = vperm.xlu1 %1462, %v822_v60   ;;  %vm814_vm8 = vcmp.eq.f32.partialorder %v1782_v57, 0.0 }
 0x125   : > { %v823_v10 = vsel %vm814_vm8, 1.0, %v1782_v57  ;;  %v895_v15 = vsel %vm814_vm8, 1, %v1520_v7 }
 0x127   : > { %v506_v61 = vpop.f32.mrb[8].mxu1  ;;  %v780_v62 = vpop.f32.mrb[8].mxu0 }
 0x128   : > { %v1787_v0 = vadd.f32 %v780_v62, %v506_v61  ;;  %v1371_v2 = vpop.f32.mrb[9].mxu0  ;;  %908 = vperm.xlu1 %1462, %v894_v63   ;;  %v1323_v3 = vpop.f32.mrb[9].mxu1 }
 0x129   : > { %v509_v4 = vpop.f32.mrb[10].mxu1  ;;  %v783_v5 = vpop.f32.mrb[10].mxu0 }
 0x12a   : > { %v1790_v6 = vadd.f32 %v783_v5, %v509_v4  ;;  %v1324_v8 = vpop.f32.mrb[11].mxu1  ;;  %v1372_v9 = vpop.f32.mrb[11].mxu0  ;;  %vm815_vm9 = vcmp.eq.f32.partialorder %v1787_v0, 0.0 }
 0x12b   : > { %v824_v11 = vsel %vm815_vm9, 1.0, %v1787_v0  ;;  %v896_v28 = vsel %vm815_vm9, 1, %v1520_v7  ;;  %v983_v48 = vpop.permute.xlu0 %982 }
 0x12c   : > { %846 = vperm.xlu1 %1462, %v823_v10   ;;  %851 = vperm.xlu0 %1463, %v824_v11   ;;  %vm816_vm11 = vcmp.eq.f32.partialorder %v1790_v6, 0.0 }
 0x12d   : > { %v825_v33 = vsel %vm816_vm11, 1.0, %v1790_v6  ;;  %v897_v36 = vsel %vm816_vm11, 1, %v1520_v7 }
 0x12f   : > { %v514_v12 = vpop.f32.mrb[12].mxu1  ;;  %v788_v13 = vpop.f32.mrb[12].mxu0 }
 0x130   : > { %v1798_v17 = vadd.f32 %v788_v13, %v514_v12  ;;  %v1375_v21 = vpop.f32.mrb[13].mxu0  ;;  %911 = vperm.xlu1 %1462, %v895_v15   ;;  %v1327_v22 = vpop.f32.mrb[13].mxu1 }
 0x131   : > { %v517_v23 = vpop.f32.mrb[14].mxu1  ;;  %v791_v24 = vpop.f32.mrb[14].mxu0 }
 0x132   : > { %v1800_v25 = vadd.f32 %v791_v24, %v517_v23  ;;  %v1328_v26 = vpop.f32.mrb[15].mxu1  ;;  %v1376_v27 = vpop.f32.mrb[15].mxu0  ;;  %vm817_vm10 = vcmp.eq.f32.partialorder %v1798_v17, 0.0 }
 0x133   : > { %v826_v29 = vsel %vm817_vm10, 1.0, %v1798_v17  ;;  %v898_v41 = vsel %vm817_vm10, 1, %v1520_v7  ;;  %v988_v49 = vpop.permute.xlu0 %987 }
 0x134   : > { %914 = vperm.xlu1 %1462, %v896_v28   ;;  %861 = vperm.xlu0 %1463, %v826_v29   ;;  %vm818_vm13 = vcmp.eq.f32.partialorder %v1800_v25, 0.0 }
 0x135   : > { %v827_v39 = vsel %vm818_vm13, 1.0, %v1800_v25  ;;  %v899_v42 = vsel %vm818_vm13, 1, %v1520_v7 }
 0x137   : > { %v522_v31 = vpop.f32.mrb[16].mxu1  ;;  %v796_v32 = vpop.f32.mrb[16].mxu0 }
 0x138   : > { %v1814_v35 = vadd.f32 %v796_v32, %v522_v31  ;;  %v1379_v16 = vpop.f32.mrb[17].mxu0  ;;  %856 = vperm.xlu1 %1462, %v825_v33   ;;  %902 = vperm.xlu0 %1463, %v892_v34   ;;  %v1331_v14 = vpop.f32.mrb[17].mxu1 }
 0x139   : > { %v525_v19 = vpop.f32.mrb[18].mxu1  ;;  %v799_v18 = vpop.f32.mrb[18].mxu0 }
 0x13a   : > { %v1332_v30 = vpop.f32.mrb[19].mxu1  ;;  %v1380_v20 = vpop.f32.mrb[19].mxu0  ;;  %vm819_vm12 = vcmp.eq.f32.partialorder %v1814_v35, 0.0 }
 0x13b   : > { %v828_v37 = vsel %vm819_vm12, 1.0, %v1814_v35  ;;  %v900_v43 = vsel %vm819_vm12, 1, %v1520_v7  ;;  %v1841_v50 = vpop.permute.xlu0 %992 }
 0x13c   : > { %917 = vperm.xlu1 %1462, %v897_v36   ;;  %871 = vperm.xlu0 %1463, %v828_v37  }
 0x140   : > { %866 = vperm.xlu1 %1462, %v827_v39   ;;  %1464 = vset.pattern.permute.xlu0 %v1520_v7 }
 0x141   : > { %997 = vperm.xlu0 %1464, %v962_v38  }
 0x144   : > { %920 = vperm.xlu1 %1462, %v898_v41  }
 0x145   : > { %1002 = vperm.xlu0 %1464, %v963_v1  }
 0x148   : > { %923 = vperm.xlu1 %1462, %v899_v42  }
 0x14c   : > { %926 = vperm.xlu1 %1462, %v900_v43  }
 0x150   : > { %1465 = vset.pattern.permute.xlu1 %v1520_v7 }
 0x151   : > { %1007 = vperm.xlu1 %1465, %v964_v45  }
 0x19b   : > { %v832_v53 = vpop.permute.xlu0 %831 }
 0x19d   : > { %v906_v54 = vpop.permute.xlu1 %905 }
 0x19e   : > { %vm929_vm14 = vcmp.eq.s32.totalorder %v906_v54, 1 }
 0x19f   : > { %v837_v55 = vpop.permute.xlu0 %836 }
 0x1a0   : > { %1474 = vrcp.f32 %v837_v55 }
 0x1a3   : > { %v842_v56 = vpop.permute.xlu1 %841 }
 0x1a4   : > { %1476 = vrcp.f32 %v842_v56 }
 0x1a5   : > { %1478 = vrcp.f32 %v832_v53 }
 0x1a7   : > { %v909_v58 = vpop.permute.xlu1 %908 }
 0x1a8   : > { %vm930_vm15 = vcmp.eq.s32.totalorder %v909_v58, 1 }
 0x1aa   : > { %v1475_v7 = vpop.eup %1474 }
 0x1ab   : > { %v847_v59 = vpop.permute.xlu1 %846  ;;  %v852_v60 = vpop.permute.xlu0 %851  ;;  %v877_v63 = vmul.f32 %v1475_v7, %v1771_v44 }
 0x1ac   : > { %1480 = vrcp.f32 %v847_v59 }
 0x1ad   : > { %1482 = vrcp.f32 %v852_v60  ;;  %v1845_v8 = vsel %vm929_vm14, 0.0, %v877_v63 }
 0x1ae   : > { %v1477_v62 = vpop.eup %1476  ;;  %v1011_v44 = vmul.f32 %v973_v51, %v1845_v8 }
 0x1af   : > { %v912_v61 = vpop.permute.xlu1 %911  ;;  %v1479_v4 = vpop.eup %1478  ;;  %v879_v5 = vmul.f32 %v1477_v62, %v1780_v52 }
 0x1b0   : > { %v875_v11 = vmul.f32 %v1479_v4, %v1769_v40  ;;  %vm931_vm1 = vcmp.eq.s32.totalorder %v912_v61, 1  ;;  %v1038_v26 = vmul.f32 %v1011_v44, %v1011_v44 }
 0x1b1   : > { %v1848_v13 = vsel %vm930_vm15, 0.0, %v879_v5 }
 0x1b2   : > { %v1012_v23 = vmul.f32 %v978_v47, %v1848_v13 }
 0x1b3   : > { %v915_v2 = vpop.permute.xlu1 %914  ;;  %v862_v3 = vpop.permute.xlu0 %861 }
 0x1b4   : > { %1484 = vrcp.f32 %v862_v3  ;;  %v1039_v33 = vmul.f32 %v1012_v23, %v1012_v23  ;;  %vm932_vm2 = vcmp.eq.s32.totalorder %v915_v2, 1 }
 0x1b6   : > { %v1481_v9 = vpop.eup %1480 }
 0x1b7   : > { %v857_v10 = vpop.permute.xlu1 %856  ;;  %v903_v12 = vpop.permute.xlu0 %902  ;;  %v881_v21 = vmul.f32 %v1481_v9, %v1782_v57 }
 0x1b8   : > { %1486 = vrcp.f32 %v857_v10  ;;  %vm928_vm0 = vcmp.eq.s32.totalorder %v903_v12, 1  ;;  %v1483_v15 = vpop.eup %1482 }
 0x1b9   : > { %v1852_v22 = vsel %vm928_vm0, 0.0, %v875_v11  ;;  %v883_v40 = vmul.f32 %v1483_v15, %v1787_v0  ;;  %v1857_v29 = vsel %vm931_vm1, 0.0, %v881_v21 }
 0x1ba   : > { %v1010_v52 = vmul.f32 %v968_v46, %v1852_v22  ;;  %v1013_v34 = vmul.f32 %v983_v48, %v1857_v29 }
 0x1bb   : > { %v918_v24 = vpop.permute.xlu1 %917  ;;  %v872_v32 = vpop.permute.xlu0 %871  ;;  %v1860_v16 = vsel %vm932_vm2, 0.0, %v883_v40 }
 0x1bc   : > { %v1020_v27 = vadd.f32 %v1011_v44, %v1010_v52  ;;  %v1037_v28 = vmul.f32 %v1010_v52, %v1010_v52  ;;  %v1014_v30 = vmul.f32 %v988_v49, %v1860_v16  ;;  %v1040_v37 = vmul.f32 %v1013_v34, %v1013_v34 }
 0x1bd   : > { %vm933_vm3 = vcmp.eq.s32.totalorder %v918_v24, 1 }
 0x1be   : > { %v1046_v31 = vadd.f32 %v1038_v26, %v1037_v28  ;;  %v1021_v14 = vadd.f32 %v1020_v27, %v1012_v23  ;;  %v1485_v19 = vpop.eup %1484  ;;  %v1041_v47 = vmul.f32 %v1014_v30, %v1014_v30 }
 0x1bf   : > { %v867_v57 = vpop.permute.xlu1 %866  ;;  %v887_v1 = vmul.f32 %v1485_v19, %v1798_v17 }
 0x1c0   : > { %1488 = vrcp.f32 %v867_v57  ;;  %v1047_v0 = vadd.f32 %v1046_v31, %v1039_v33  ;;  %v1022_v38 = vadd.f32 %v1021_v14, %v1013_v34  ;;  %v998_v45 = vpop.permute.xlu0 %997 }
 0x1c1   : > { %1490 = vrcp.f32 %v872_v32  ;;  %v1036_v32 = vld [vmem:[#allocation3] sm:$0x1] }
 0x1c2   : > { %v1487_v18 = vpop.eup %1486  ;;  %v1048_v42 = vadd.f32 %v1047_v0, %v1040_v37 }
 0x1c3   : > { %v885_v20 = vmul.f32 %v1487_v18, %v1790_v6  ;;  %v921_v36 = vpop.permute.xlu1 %920  ;;  %v1023_v6 = vadd.f32 %v1022_v38, %v1014_v30  ;;  %v1089_v38 = vlaneseq }
 0x1c4   : > { %vm934_vm4 = vcmp.eq.s32.totalorder %v921_v36, 1  ;;  %v1049_v53 = vadd.f32 %v1048_v42, %v1041_v47  ;;  %v1003_v59 = vpop.permute.xlu0 %1002  ;;  %v1076_v47 = vld [vmem:[%s1907_s3] sm:$0x1] }
 0x1c5   : > { %v1864_v39 = vsel %vm933_vm3, 0.0, %v885_v20  ;;  %v1869_v43 = vsel %vm934_vm4, 0.0, %v887_v1  ;;  %v1090_v1 = vshrl.u32 %v1089_v38, 7 }
 0x1c6   : > { %v1015_v41 = vmul.f32 %v1841_v50, %v1864_v39  ;;  %v1016_v54 = vmul.f32 %v998_v45, %v1869_v43 }
 0x1c7   : > { %v924_v46 = vpop.permute.xlu1 %923  ;;  %v1091_v42 = vsub.s32 0, %v1090_v1 }
 0x1c8   : > { %v1042_v48 = vmul.f32 %v1015_v41, %v1015_v41  ;;  %v1024_v51 = vadd.f32 %v1023_v6, %v1015_v41  ;;  %vm935_vm5 = vcmp.eq.s32.totalorder %v924_v46, 1  ;;  %v1043_v7 = vmul.f32 %v1016_v54, %v1016_v54  ;;  %v1072_v41 = vld [vmem:[%s1906_s2] sm:$0x1] }
 0x1ca   : > { %v1489_v49 = vpop.eup %1488  ;;  %v1050_v58 = vadd.f32 %v1049_v53, %v1042_v48  ;;  %v1025_v60 = vadd.f32 %v1024_v51, %v1016_v54 }
 0x1cb   : > { %v1491_v55 = vpop.eup %1490  ;;  %v889_v56 = vmul.f32 %v1489_v49, %v1800_v25  ;;  %v927_v17 = vpop.permute.xlu1 %926 }
 0x1cc   : > { %vm936_vm6 = vcmp.eq.s32.totalorder %v927_v17, 1  ;;  %v891_v62 = vmul.f32 %v1491_v55, %v1814_v35  ;;  %v1051_v63 = vadd.f32 %v1050_v58, %v1043_v7  ;;  %v1019_v35 = vld [vmem:[#allocation2] sm:$0x1] }
 0x1cd   : > { %v1873_v50 = vsel %vm935_vm5, 0.0, %v889_v56 }
 0x1ce   : > { %v1017_v61 = vmul.f32 %v1003_v59, %v1873_v50  ;;  %v945_v5 = vsel %vm936_vm6, 0.0, %v891_v62 }
 0x1d0   : > { %v1026_v2 = vadd.f32 %v1025_v60, %v1017_v61  ;;  %v1044_v3 = vmul.f32 %v1017_v61, %v1017_v61  ;;  %v1008_v4 = vpop.permute.xlu1 %1007 }
 0x1d1   : > { %v1018_v9 = vmul.f32 %v1008_v4, %v945_v5 }
 0x1d2   : > { %v1052_v25 = vadd.f32 %v1051_v63, %v1044_v3 }
 0x1d3   : > { %v1027_v10 = vadd.f32 %v1026_v2, %v1018_v9  ;;  %v1045_v11 = vmul.f32 %v1018_v9, %v1018_v9 }
 0x1d5   : > { %v1028_v12 = vrot.slane %v1027_v10, 4  ;;  %v1053_v44 = vadd.f32 %v1052_v25, %v1045_v11 }
 0x1d7   : > { %v1029_v15 = vadd.f32 %v1028_v12, %v1027_v10  ;;  %v1054_v21 = vrot.slane %v1053_v44, 4 }
 0x1d9   : > { %v1030_v52 = vrot.slane %v1029_v15, 2  ;;  %v1055_v23 = vadd.f32 %v1054_v21, %v1053_v44 }
 0x1db   : > { %v1031_v24 = vadd.f32 %v1030_v52, %v1029_v15  ;;  %v1056_v40 = vrot.slane %v1055_v23, 2 }
 0x1dd   : > { %v1032_v26 = vrot.slane %v1031_v24, 1  ;;  %v1057_v27 = vadd.f32 %v1056_v40, %v1055_v23 }
 0x1df   : > { %v1033_v28 = vadd.f32 %v1032_v26, %v1031_v24  ;;  %v1058_v31 = vrot.slane %v1057_v27, 1 }
 0x1e1   : > { %v1034_v33 = vadd.f32 %v1033_v28, %v1019_v35  ;;  %v1059_v57 = vadd.f32 %v1058_v31, %v1057_v27 }
 0x1e3   : > { %1035 = vst [vmem:[#allocation2] sm:$0x1] %v1034_v33  ;;  %v1060_v34 = vadd.f32 %v1059_v57, %v1036_v32 }
 0x1e5   : > { %1061 = vst [vmem:[#allocation3] sm:$0x1] %v1060_v34 }
 0x1ea   : > { %v1065_v14 = vld [vmem:[#allocation2] sm:$0x1] }
 0x1eb   : > { %v1066_v19 = vmul.f32 0.015625, %v1065_v14 }
 0x1ec   : > { %v1067_v18 = vld [vmem:[#allocation3] sm:$0x1] }
 0x1ed   : > { %v1068_v0 = vmul.f32 0.015625, %v1067_v18  ;;  %v1069_v30 = vmul.f32 %v1066_v19, %v1066_v19 }
 0x1ef   : > { %v1070_v20 = vsub.f32 %v1068_v0, %v1069_v30 }
 0x1f1   : > { %v1071_v36 = vmax.f32 %v1070_v20, 0.0 }
 0x1f3   : > { %v1073_v37 = vadd.f32 1e-05, %v1071_v36 }
 0x1f5   : > { %1492 = vrsqrt.f32 %v1073_v37 }
 0x1ff   : > { %v1493_v45 = vpop.eup %1492 }
 0x200   : > { %v1075_v46 = vmul.f32 %v1493_v45, %v1072_v41 }
 0x202   : > { %v1077_v48 = vmul.f32 %v1075_v46, %v1066_v19  ;;  %v1092_v6 = vrot.slane %v1075_v46, %v1091_v42 }
 0x204   : > { %v1078_v49 = vsub.f32 %v1076_v47, %v1077_v48  ;;  %v1094_v51 = vmul.f32 %v1092_v6, %v1852_v22  ;;  %v1095_v53 = vmul.f32 %v1092_v6, %v1845_v8  ;;  %v1096_v54 = vmul.f32 %v1092_v6, %v1848_v13 }
 0x205   : > { %v1097_v55 = vmul.f32 %v1092_v6, %v1857_v29  ;;  %v1098_v56 = vmul.f32 %v1092_v6, %v1860_v16  ;;  %v1099_v58 = vmul.f32 %v1092_v6, %v1864_v39  ;;  %v1100_v59 = vmul.f32 %v1092_v6, %v1869_v43 }
 0x206   : > { %v1107_v17 = vrot.slane %v1078_v49, %v1091_v42  ;;  %v1101_v60 = vmul.f32 %v1092_v6, %v1873_v50  ;;  %v1102_v22 = vmul.f32 %v1092_v6, %v945_v5 }
 0x208   : > { %v1109_v7 = vadd.f32 %v1107_v17, %v1094_v51  ;;  %v1110_v8 = vadd.f32 %v1107_v17, %v1095_v53  ;;  %v1111_v61 = vadd.f32 %v1107_v17, %v1096_v54  ;;  %v1112_v13 = vadd.f32 %v1107_v17, %v1097_v55 }
 0x209   : > { %v1113_v62 = vadd.f32 %v1107_v17, %v1098_v56  ;;  %v1114_v29 = vadd.f32 %v1107_v17, %v1099_v58  ;;  %v1115_v63 = vadd.f32 %v1107_v17, %v1100_v59  ;;  %v1116_v16 = vadd.f32 %v1107_v17, %v1101_v60 }
 0x20a   : > { %v1117_v2 = vadd.f32 %v1107_v17, %v1102_v22  ;;  %1118 = vst [vmem:[%s258_s25] sm:$0xff] %v1109_v7  ;;  %1119 = vst [vmem:[%s258_s25 + $0x8] sm:$0xff] %v1110_v8 }
 0x20b   : > { %1120 = vst [vmem:[%s258_s25 + $0x10] sm:$0xff] %v1111_v61  ;;  %1121 = vst [vmem:[%s258_s25 + $0x18] sm:$0xff] %v1112_v13 }
 0x20c   : > { %1122 = vst [vmem:[%s258_s25 + $0x20] sm:$0xff] %v1113_v62  ;;  %1123 = vst [vmem:[%s258_s25 + $0x28] sm:$0xff] %v1114_v29 }
 0x20d   : > { %1124 = vst [vmem:[%s258_s25 + $0x30] sm:$0xff] %v1115_v63  ;;  %1125 = vst [vmem:[%s258_s25 + $0x38] sm:$0xff] %v1116_v16 }
 0x20e   : > { %1126 = vst [vmem:[%s258_s25 + $0x40] sm:$0xff] %v1117_v2 }
 0x20f PF: > { %s15_s20 = sadd.s32 1, %s1516_s20   ;;  %s1910_s18 = smov %s1512_s19 }
 0x210   : > { %p12_p5 = scmp.ge.s32.totalorder %s15_s20, 4   ;;  %s1911_s19 = smov %s1913_s21 }
 0x212   :  { %14 = sbr.rel (!%p12_p5) target bundleno = 2 (0x2), region = 86 }

</bundles_post_ra>
